<compile_context>
chip_gen: v5e
topology: v5e:2x2
jax: 0.10.0
libtpu: 0.0.40
codegen_flags: <defaults>
</compile_context>

<pallas_src>
import jax
import jax.numpy as jnp
from jax.experimental import pallas as pl
from jax.experimental.pallas import tpu as pltpu

EPS = 1e-5
LANES = 128
SUBLANES = 8


def build_layout(input_dim, hidden, n_actions):
    """Row layout of the packed [rows, 128] f32 parameter slab.

    Weight regions are padded to a full 128 rows (so each matmul is a uniform
    [B,128] x [128,128]); vector regions (bias / gamma / beta) get one 8-row
    aligned region each. All regions span the full 128 lanes (zero padded).
    Layout entries: name -> (row_start, region_rows, valid_rows, valid_cols).
    """
    shapes = [
        ("w1", input_dim, hidden, LANES),
        ("w2", hidden, hidden // 2, LANES),
        ("w3", hidden // 2, hidden // 4, LANES),
        ("w4", hidden // 4, n_actions, LANES),
        ("b4", 1, n_actions, SUBLANES),
        ("g1", 1, hidden, SUBLANES), ("be1", 1, hidden, SUBLANES),
        ("g2", 1, hidden // 2, SUBLANES), ("be2", 1, hidden // 2, SUBLANES),
        ("g3", 1, hidden // 4, SUBLANES), ("be3", 1, hidden // 4, SUBLANES),
    ]
    layout = {}
    row = 0
    for name, nr, nc, region_rows in shapes:
        assert nr <= region_rows and nc <= LANES
        layout[name] = (row, region_rows, nr, nc)
        row += region_rows
    return layout, row  # row is a multiple of 8


def pack_params(params, bn, layout, total_rows):
    """Pack weights / BN params into one zero-filled, lane-padded f32 slab.

    b1..b3 are intentionally omitted (cancelled by training-mode BN).
    The zero fill is a correctness invariant for the full-lane kernel reads.
    """
    (w1, _b1), (w2, _b2), (w3, _b3), (w4, b4) = params
    (g1, be1), (g2, be2), (g3, be3) = bn
    tensors = {"w1": w1, "w2": w2, "w3": w3, "w4": w4, "b4": b4,
               "g1": g1, "be1": be1, "g2": g2, "be2": be2,
               "g3": g3, "be3": be3}
    slab = jnp.zeros((total_rows, LANES), jnp.float32)
    for name, arr in tensors.items():
        r0, _rr, nr, nc = layout[name]
        slab = slab.at[r0:r0 + nr, 0:nc].set(arr.astype(jnp.float32))
    return slab


def make_dqn_kernel(layout):
    """Build the kernel with the (static) slab layout baked in as Python ints."""

    def w(p_ref, name):
        # Full padded [128, 128] weight tile (static slice -> zero cost).
        r0, rr, _, _ = layout[name]
        return p_ref[r0:r0 + rr, :]

    def v(p_ref, name):
        # Lane-dense [1, 128] vector row.
        r0, _, _, _ = layout[name]
        return p_ref[r0:r0 + 1, :]

    def kernel(x_ref, p_ref, o_ref):
        def bn_relu(h, g, be):
            # One-pass batch stats -> fused scale/shift + ReLU.
            # Padded lanes: h == 0 -> mean/var == 0; gamma/beta == 0 keeps them 0.
            inv_b = jnp.float32(1.0 / h.shape[0])
            s1 = jnp.sum(h, axis=0, keepdims=True)
            s2 = jnp.sum(h * h, axis=0, keepdims=True)
            mean = s1 * inv_b
            var = jnp.maximum(s2 * inv_b - mean * mean, 0.0)
            scale = g * jax.lax.rsqrt(var + EPS)
            shift = be - mean * scale
            return jnp.maximum(h * scale + shift, 0.0)

        # x is already lane-padded [B, 128] f32.
        h = x_ref[...]
        # Pre-BN biases (b1..b3) omitted: cancelled by training-mode BN mean.
        h = bn_relu(
            jnp.dot(h, w(p_ref, "w1"), preferred_element_type=jnp.float32),
            v(p_ref, "g1"), v(p_ref, "be1"))
        h = bn_relu(
            jnp.dot(h, w(p_ref, "w2"), preferred_element_type=jnp.float32),
            v(p_ref, "g2"), v(p_ref, "be2"))
        h = bn_relu(
            jnp.dot(h, w(p_ref, "w3"), preferred_element_type=jnp.float32),
            v(p_ref, "g3"), v(p_ref, "be3"))
        # Final linear on the full padded tile -> lane-dense output store.
        out = (jnp.dot(h, w(p_ref, "w4"), preferred_element_type=jnp.float32)
               + v(p_ref, "b4"))
        o_ref[...] = out.astype(o_ref.dtype)

    return kernel


def dqn_forward(x, slab, layout, n_actions):
    B, in_dim = x.shape
    # Lane-pad x to [B, 128] (zeros beyond input_dim) so the first matmul is
    # also a uniform lane-dense [B,128] x [128,128].
    x_pad = jnp.zeros((B, LANES), jnp.float32).at[:, :in_dim].set(
        x.astype(jnp.float32))

    kernel = make_dqn_kernel(layout)
    vmem = pl.BlockSpec(memory_space=pltpu.MemorySpace.VMEM)
    out = pl.pallas_call(
        kernel,
        out_shape=jax.ShapeDtypeStruct((B, LANES), jnp.float32),
        in_specs=[vmem, vmem],
        out_specs=vmem,
    )(x_pad, slab)
    return out[:, :n_actions]


def init_params(key, input_dim, hidden, n_actions):
    """PyTorch-style deterministic init. Weights stored [in, out]; biases [1, out]."""
    dims = [(input_dim, hidden),
            (hidden, hidden // 2),
            (hidden // 2, hidden // 4),
            (hidden // 4, n_actions)]
    params = []
    for (fan_in, fan_out) in dims:
        key, kw, kb = jax.random.split(key, 3)
        bound = 1.0 / jnp.sqrt(jnp.float32(fan_in))
        w = jax.random.uniform(kw, (fan_in, fan_out), jnp.float32, -bound, bound)
        b = jax.random.uniform(kb, (1, fan_out), jnp.float32, -bound, bound)
        params.append((w, b))
    # BatchNorm affine params: gamma = 1, beta = 0 (PyTorch default).
    bn = [(jnp.ones((1, f), jnp.float32), jnp.zeros((1, f), jnp.float32))
          for f in (hidden, hidden // 2, hidden // 4)]
    return params, bn


def dqn_reference(x, params, bn):
    """Pure-JAX reference with full PyTorch semantics (incl. b1..b3, two-pass BN)."""
    (w1, b1), (w2, b2), (w3, b3), (w4, b4) = params
    (g1, be1), (g2, be2), (g3, be3) = bn

    def bn_relu(h, g, be):
        mean = jnp.mean(h, axis=0, keepdims=True)
        var = jnp.mean((h - mean) ** 2, axis=0, keepdims=True)
        return jnp.maximum((h - mean) / jnp.sqrt(var + EPS) * g + be, 0.0)

    h = bn_relu(x @ w1 + b1, g1, be1)
    h = bn_relu(h @ w2 + b2, g2, be2)
    h = bn_relu(h @ w3 + b3, g3, be3)
    return h @ w4 + b4


if __name__ == "__main__":
    B, input_dim, hidden, n_actions = 8, 16, 32, 4

    key = jax.random.PRNGKey(0)
    key, kx = jax.random.split(key)
    x = jax.random.normal(kx, (B, input_dim), jnp.float32)
    params, bn = init_params(key, input_dim, hidden, n_actions)

    layout, total_rows = build_layout(input_dim, hidden, n_actions)
    slab = pack_params(params, bn, layout, total_rows)

    out = dqn_forward(x, slab, layout, n_actions)
    jax.block_until_ready(out)

    ref = dqn_reference(x, params, bn)
    assert out.shape == (B, n_actions)
    assert jnp.allclose(out, ref, atol=1e-4, rtol=1e-4), "mismatch vs JAX reference"

    print("KERNEL_OK")
</pallas_src>

<mosaic_0001>
module attributes {stable_mosaic.version = 11 : i64} {
  func.func @kernel(%arg0: memref<8x128xf32, #tpu.memory_space<vmem>>, %arg1: memref<568x128xf32, #tpu.memory_space<vmem>>, %arg2: memref<8x128xf32, #tpu.memory_space<vmem>>) attributes {dimension_semantics = [], scalar_prefetch = 0 : i64, scratch_operands = 0 : i64, tpu.core_type = #tpu.core_type<tc>} {
    %c0 = arith.constant 0 : index
    %c0_0 = arith.constant 0 : index
    %0 = vector.load %arg0[%c0, %c0_0] : memref<8x128xf32, #tpu.memory_space<vmem>>, vector<8x128xf32>
    %c0_1 = arith.constant 0 : index
    %c0_2 = arith.constant 0 : index
    %1 = vector.load %arg1[%c0_1, %c0_2] : memref<568x128xf32, #tpu.memory_space<vmem>>, vector<128x128xf32>
    %cst = arith.constant dense<0.000000e+00> : vector<8x128xf32>
    %2 = tpu.matmul %0, %1, %cst {dimension_numbers = #tpu.dot_dimension_numbers<[1], [0], [0], [1], [0, 0, 1, 1], [], []>} : vector<8x128xf32>, vector<128x128xf32>, vector<8x128xf32> -> vector<8x128xf32>
    %c520 = arith.constant 520 : index
    %c0_3 = arith.constant 0 : index
    %3 = vector.load %arg1[%c520, %c0_3] : memref<568x128xf32, #tpu.memory_space<vmem>>, vector<1x128xf32>
    %c528 = arith.constant 528 : index
    %c0_4 = arith.constant 0 : index
    %4 = vector.load %arg1[%c528, %c0_4] : memref<568x128xf32, #tpu.memory_space<vmem>>, vector<1x128xf32>
    %cst_5 = arith.constant dense<0.000000e+00> : vector<128xf32>
    %5 = vector.multi_reduction <add>, %2, %cst_5 [0] : vector<8x128xf32> to vector<128xf32>
    %6 = vector.shape_cast %5 : vector<128xf32> to vector<1x128xf32>
    %7 = arith.mulf %2, %2 : vector<8x128xf32>
    %cst_6 = arith.constant dense<0.000000e+00> : vector<128xf32>
    %8 = vector.multi_reduction <add>, %7, %cst_6 [0] : vector<8x128xf32> to vector<128xf32>
    %9 = vector.shape_cast %8 : vector<128xf32> to vector<1x128xf32>
    %cst_7 = arith.constant 1.250000e-01 : f32
    %10 = vector.broadcast %cst_7 : f32 to vector<1x128xf32>
    %11 = arith.mulf %6, %10 : vector<1x128xf32>
    %cst_8 = arith.constant 1.250000e-01 : f32
    %12 = vector.broadcast %cst_8 : f32 to vector<1x128xf32>
    %13 = arith.mulf %9, %12 : vector<1x128xf32>
    %14 = arith.mulf %11, %11 : vector<1x128xf32>
    %15 = arith.subf %13, %14 : vector<1x128xf32>
    %cst_9 = arith.constant 0.000000e+00 : f32
    %16 = vector.broadcast %cst_9 : f32 to vector<1x128xf32>
    %17 = arith.maximumf %15, %16 : vector<1x128xf32>
    %cst_10 = arith.constant 9.99999974E-6 : f32
    %18 = vector.broadcast %cst_10 : f32 to vector<1x128xf32>
    %19 = arith.addf %17, %18 : vector<1x128xf32>
    %20 = math.rsqrt %19 : vector<1x128xf32>
    %21 = arith.mulf %3, %20 : vector<1x128xf32>
    %22 = arith.mulf %11, %21 : vector<1x128xf32>
    %23 = arith.subf %4, %22 : vector<1x128xf32>
    %24 = vector.broadcast %21 : vector<1x128xf32> to vector<8x128xf32>
    %25 = arith.mulf %2, %24 : vector<8x128xf32>
    %26 = vector.broadcast %23 : vector<1x128xf32> to vector<8x128xf32>
    %27 = arith.addf %25, %26 : vector<8x128xf32>
    %cst_11 = arith.constant 0.000000e+00 : f32
    %28 = vector.broadcast %cst_11 : f32 to vector<8x128xf32>
    %29 = arith.maximumf %27, %28 : vector<8x128xf32>
    %c128 = arith.constant 128 : index
    %c0_12 = arith.constant 0 : index
    %30 = vector.load %arg1[%c128, %c0_12] : memref<568x128xf32, #tpu.memory_space<vmem>>, vector<128x128xf32>
    %cst_13 = arith.constant dense<0.000000e+00> : vector<8x128xf32>
    %31 = tpu.matmul %29, %30, %cst_13 {dimension_numbers = #tpu.dot_dimension_numbers<[1], [0], [0], [1], [0, 0, 1, 1], [], []>} : vector<8x128xf32>, vector<128x128xf32>, vector<8x128xf32> -> vector<8x128xf32>
    %c536 = arith.constant 536 : index
    %c0_14 = arith.constant 0 : index
    %32 = vector.load %arg1[%c536, %c0_14] : memref<568x128xf32, #tpu.memory_space<vmem>>, vector<1x128xf32>
    %c544 = arith.constant 544 : index
    %c0_15 = arith.constant 0 : index
    %33 = vector.load %arg1[%c544, %c0_15] : memref<568x128xf32, #tpu.memory_space<vmem>>, vector<1x128xf32>
    %cst_16 = arith.constant dense<0.000000e+00> : vector<128xf32>
    %34 = vector.multi_reduction <add>, %31, %cst_16 [0] : vector<8x128xf32> to vector<128xf32>
    %35 = vector.shape_cast %34 : vector<128xf32> to vector<1x128xf32>
    %36 = arith.mulf %31, %31 : vector<8x128xf32>
    %cst_17 = arith.constant dense<0.000000e+00> : vector<128xf32>
    %37 = vector.multi_reduction <add>, %36, %cst_17 [0] : vector<8x128xf32> to vector<128xf32>
    %38 = vector.shape_cast %37 : vector<128xf32> to vector<1x128xf32>
    %cst_18 = arith.constant 1.250000e-01 : f32
    %39 = vector.broadcast %cst_18 : f32 to vector<1x128xf32>
    %40 = arith.mulf %35, %39 : vector<1x128xf32>
    %cst_19 = arith.constant 1.250000e-01 : f32
    %41 = vector.broadcast %cst_19 : f32 to vector<1x128xf32>
    %42 = arith.mulf %38, %41 : vector<1x128xf32>
    %43 = arith.mulf %40, %40 : vector<1x128xf32>
    %44 = arith.subf %42, %43 : vector<1x128xf32>
    %cst_20 = arith.constant 0.000000e+00 : f32
    %45 = vector.broadcast %cst_20 : f32 to vector<1x128xf32>
    %46 = arith.maximumf %44, %45 : vector<1x128xf32>
    %cst_21 = arith.constant 9.99999974E-6 : f32
    %47 = vector.broadcast %cst_21 : f32 to vector<1x128xf32>
    %48 = arith.addf %46, %47 : vector<1x128xf32>
    %49 = math.rsqrt %48 : vector<1x128xf32>
    %50 = arith.mulf %32, %49 : vector<1x128xf32>
    %51 = arith.mulf %40, %50 : vector<1x128xf32>
    %52 = arith.subf %33, %51 : vector<1x128xf32>
    %53 = vector.broadcast %50 : vector<1x128xf32> to vector<8x128xf32>
    %54 = arith.mulf %31, %53 : vector<8x128xf32>
    %55 = vector.broadcast %52 : vector<1x128xf32> to vector<8x128xf32>
    %56 = arith.addf %54, %55 : vector<8x128xf32>
    %cst_22 = arith.constant 0.000000e+00 : f32
    %57 = vector.broadcast %cst_22 : f32 to vector<8x128xf32>
    %58 = arith.maximumf %56, %57 : vector<8x128xf32>
    %c256 = arith.constant 256 : index
    %c0_23 = arith.constant 0 : index
    %59 = vector.load %arg1[%c256, %c0_23] : memref<568x128xf32, #tpu.memory_space<vmem>>, vector<128x128xf32>
    %cst_24 = arith.constant dense<0.000000e+00> : vector<8x128xf32>
    %60 = tpu.matmul %58, %59, %cst_24 {dimension_numbers = #tpu.dot_dimension_numbers<[1], [0], [0], [1], [0, 0, 1, 1], [], []>} : vector<8x128xf32>, vector<128x128xf32>, vector<8x128xf32> -> vector<8x128xf32>
    %c552 = arith.constant 552 : index
    %c0_25 = arith.constant 0 : index
    %61 = vector.load %arg1[%c552, %c0_25] : memref<568x128xf32, #tpu.memory_space<vmem>>, vector<1x128xf32>
    %c560 = arith.constant 560 : index
    %c0_26 = arith.constant 0 : index
    %62 = vector.load %arg1[%c560, %c0_26] : memref<568x128xf32, #tpu.memory_space<vmem>>, vector<1x128xf32>
    %cst_27 = arith.constant dense<0.000000e+00> : vector<128xf32>
    %63 = vector.multi_reduction <add>, %60, %cst_27 [0] : vector<8x128xf32> to vector<128xf32>
    %64 = vector.shape_cast %63 : vector<128xf32> to vector<1x128xf32>
    %65 = arith.mulf %60, %60 : vector<8x128xf32>
    %cst_28 = arith.constant dense<0.000000e+00> : vector<128xf32>
    %66 = vector.multi_reduction <add>, %65, %cst_28 [0] : vector<8x128xf32> to vector<128xf32>
    %67 = vector.shape_cast %66 : vector<128xf32> to vector<1x128xf32>
    %cst_29 = arith.constant 1.250000e-01 : f32
    %68 = vector.broadcast %cst_29 : f32 to vector<1x128xf32>
    %69 = arith.mulf %64, %68 : vector<1x128xf32>
    %cst_30 = arith.constant 1.250000e-01 : f32
    %70 = vector.broadcast %cst_30 : f32 to vector<1x128xf32>
    %71 = arith.mulf %67, %70 : vector<1x128xf32>
    %72 = arith.mulf %69, %69 : vector<1x128xf32>
    %73 = arith.subf %71, %72 : vector<1x128xf32>
    %cst_31 = arith.constant 0.000000e+00 : f32
    %74 = vector.broadcast %cst_31 : f32 to vector<1x128xf32>
    %75 = arith.maximumf %73, %74 : vector<1x128xf32>
    %cst_32 = arith.constant 9.99999974E-6 : f32
    %76 = vector.broadcast %cst_32 : f32 to vector<1x128xf32>
    %77 = arith.addf %75, %76 : vector<1x128xf32>
    %78 = math.rsqrt %77 : vector<1x128xf32>
    %79 = arith.mulf %61, %78 : vector<1x128xf32>
    %80 = arith.mulf %69, %79 : vector<1x128xf32>
    %81 = arith.subf %62, %80 : vector<1x128xf32>
    %82 = vector.broadcast %79 : vector<1x128xf32> to vector<8x128xf32>
    %83 = arith.mulf %60, %82 : vector<8x128xf32>
    %84 = vector.broadcast %81 : vector<1x128xf32> to vector<8x128xf32>
    %85 = arith.addf %83, %84 : vector<8x128xf32>
    %cst_33 = arith.constant 0.000000e+00 : f32
    %86 = vector.broadcast %cst_33 : f32 to vector<8x128xf32>
    %87 = arith.maximumf %85, %86 : vector<8x128xf32>
    %c384 = arith.constant 384 : index
    %c0_34 = arith.constant 0 : index
    %88 = vector.load %arg1[%c384, %c0_34] : memref<568x128xf32, #tpu.memory_space<vmem>>, vector<128x128xf32>
    %cst_35 = arith.constant dense<0.000000e+00> : vector<8x128xf32>
    %89 = tpu.matmul %87, %88, %cst_35 {dimension_numbers = #tpu.dot_dimension_numbers<[1], [0], [0], [1], [0, 0, 1, 1], [], []>} : vector<8x128xf32>, vector<128x128xf32>, vector<8x128xf32> -> vector<8x128xf32>
    %c512 = arith.constant 512 : index
    %c0_36 = arith.constant 0 : index
    %90 = vector.load %arg1[%c512, %c0_36] : memref<568x128xf32, #tpu.memory_space<vmem>>, vector<1x128xf32>
    %91 = vector.broadcast %90 : vector<1x128xf32> to vector<8x128xf32>
    %92 = arith.addf %89, %91 : vector<8x128xf32>
    %c0_37 = arith.constant 0 : index
    %c0_38 = arith.constant 0 : index
    %93 = vector.load %arg2[%c0_37, %c0_38] : memref<8x128xf32, #tpu.memory_space<vmem>>, vector<8x128xf32>
    tpu.vector_store %arg2[%c0_37, %c0_38], %92 {strides = array<i32>} : memref<8x128xf32, #tpu.memory_space<vmem>>, vector<8x128xf32>,
    return
  }
}

</mosaic_0001>

<bundles_post_ra>
// kernel: tpu_custom_call.1
= control target key start
LH: loop header
LB: loop body
LE: loop exit
PB: predicated region body
PF: predicated region fallthrough
CT: control target
= control target key end

     0   :  { %7 = vsyncpa [#allocation3], 0  ;;  %s444_s0 = inlined_call_operand.hbm [shape: f32[8,128], index: 0, kind: input, shape index: {}]   ;;  %s445_s1 = inlined_call_operand.hbm [shape: f32[568,128], index: 1, kind: input, shape index: {}]   ;;  %s446_s2 = inlined_call_operand.hbm [shape: f32[8,128], index: 2, kind: output, shape index: {}]  }
   0x1   :  { %8 = vsyncpa [#allocation6], 0 }
   0x2   :  { %9 = vsyncpa [#allocation4], 0  ;;  %s15_s11 = sshll.u32 %s444_s0, 4  ;;  %s415_s12 = smov [#allocation2]   ;;  %s16_s11 = int_to_ptr.hbm [resolvable:$true] %s15_s11 }
   0x3   :  { %s17_s13 = sshll.u32 %s415_s12, 4  ;;  %s25_s16 = sshll.u32 %s445_s1, 4  ;;  %s18_s13 = int_to_ptr.vmem [resolvable:$true] %s17_s13  ;;  %s26_s16 = int_to_ptr.hbm [resolvable:$true] %s25_s16 }
   0x4   :  { %20 = dma.hbm_to_vmem [thread:$0]  %s16_s11, 128, %s18_s13, [#allocation3]  }
   0x5   :  { %s416_s17 = smov [#allocation5]   ;;  %s417_s19 = smov 128  }
   0x6   :  { %s27_s18 = sshll.u32 %s416_s17, 4  ;;  %s418_s20 = smov 8   ;;  %s28_s18 = int_to_ptr.vmem [resolvable:$true] %s27_s18 }
   0x7   :  { %33 = dma.hbm_to_vmem [thread:$0]  %s26_s16, 9088, %s28_s18, [#allocation6], %s417_s19, %s417_s19, %s418_s20  }
   0x8   :  { %409 = dma.done.wait [#allocation3], 128  }
   0x9   :  { %410 = vsyncadd [#allocation3], 4294967168 }
   0xa   :  { %411 = dma.done.wait [#allocation6], 9088  }
   0xb   :  { %412 = vsyncadd [#allocation6], 4294958208  ;;  %v58_v0 = vld [vmem:[#allocation5 + $0x78] sm:$0xff]  ;;  %v57_v1 = vld [vmem:[#allocation5 + $0x70] sm:$0xff]  ;;  %s419_s0 = smov [#allocation7]   ;;  %s314_s23 = sshll.u32 %s446_s2, 4  ;;  %s315_s23 = int_to_ptr.hbm [resolvable:$true] %s314_s23 }
   0xc   :  { %59 = vmatpush.msra.mxu0 %v58_v0  ;;  %v56_v2 = vld [vmem:[#allocation5 + $0x68] sm:$0xff]  ;;  %v55_v3 = vld [vmem:[#allocation5 + $0x60] sm:$0xff]  ;;  %v54_v4 = vld [vmem:[#allocation5 + $0x58] sm:$0xff]  ;;  %s312_s1 = sshll.u32 %s419_s0, 4  ;;  %s313_s1 = int_to_ptr.vmem [resolvable:$true] %s312_s1 }
   0xd   :  { %v53_v5 = vld [vmem:[#allocation5 + $0x50] sm:$0xff]  ;;  %v52_v6 = vld [vmem:[#allocation5 + $0x48] sm:$0xff]  ;;  %v51_v7 = vld [vmem:[#allocation5 + $0x40] sm:$0xff] }
   0xe   :  { %60 = vmatpush.msra.mxu0 %v57_v1  ;;  %v50_v8 = vld [vmem:[#allocation5 + $0x38] sm:$0xff]  ;;  %v49_v9 = vld [vmem:[#allocation5 + $0x30] sm:$0xff]  ;;  %v48_v10 = vld [vmem:[#allocation5 + $0x28] sm:$0xff] }
   0xf   :  { %v47_v11 = vld [vmem:[#allocation5 + $0x20] sm:$0xff]  ;;  %v46_v12 = vld [vmem:[#allocation5 + $0x18] sm:$0xff]  ;;  %v45_v13 = vld [vmem:[#allocation5 + $0x10] sm:$0xff] }
  0x10   :  { %61 = vmatpush.msra.mxu0 %v56_v2  ;;  %v44_v14 = vld [vmem:[#allocation5 + $0x8] sm:$0xff]  ;;  %v43_v15 = vld [vmem:[#allocation5] sm:$0xff]  ;;  %v42_v16 = vld [vmem:[#allocation2] sm:$0xff] }
  0x11   :  { %v133_v17 = vld [vmem:[#allocation5 + $0xf8] sm:$0xff]  ;;  %v132_v18 = vld [vmem:[#allocation5 + $0xf0] sm:$0xff]  ;;  %v131_v19 = vld [vmem:[#allocation5 + $0xe8] sm:$0xff] }
  0x12   :  { %62 = vmatpush.msra.mxu0 %v55_v3  ;;  %134 = vmatpush.msra.mxu1 %v133_v17  ;;  %v130_v20 = vld [vmem:[#allocation5 + $0xe0] sm:$0xff]  ;;  %v129_v21 = vld [vmem:[#allocation5 + $0xd8] sm:$0xff]  ;;  %v128_v22 = vld [vmem:[#allocation5 + $0xd0] sm:$0xff] }
  0x13   :  { %v127_v26 = vld [vmem:[#allocation5 + $0xc8] sm:$0xff]  ;;  %v126_v29 = vld [vmem:[#allocation5 + $0xc0] sm:$0xff]  ;;  %v125_v32 = vld [vmem:[#allocation5 + $0xb8] sm:$0xff] }
  0x14   :  { %63 = vmatpush.msra.mxu0 %v54_v4  ;;  %135 = vmatpush.msra.mxu1 %v132_v18  ;;  %v124_v35 = vld [vmem:[#allocation5 + $0xb0] sm:$0xff]  ;;  %v123_v38 = vld [vmem:[#allocation5 + $0xa8] sm:$0xff]  ;;  %v122_v41 = vld [vmem:[#allocation5 + $0xa0] sm:$0xff] }
  0x15   :  { %v121_v44 = vld [vmem:[#allocation5 + $0x98] sm:$0xff]  ;;  %v120_v45 = vld [vmem:[#allocation5 + $0x90] sm:$0xff]  ;;  %v119_v48 = vld [vmem:[#allocation5 + $0x88] sm:$0xff] }
  0x16   :  { %64 = vmatpush.msra.mxu0 %v53_v5  ;;  %136 = vmatpush.msra.mxu1 %v131_v19  ;;  %v118_v50 = vld [vmem:[#allocation5 + $0x80] sm:$0xff]  ;;  %v79_v58 = vld [vmem:[#allocation5 + $0x208] sm:$0x1]  ;;  %v80_v62 = vld [vmem:[#allocation5 + $0x210] sm:$0x1] }
  0x17   :  { %v201_v18 = vld [vmem:[#allocation5 + $0x140] sm:$0xff] }
  0x18   :  { %65 = vmatpush.msra.mxu0 %v52_v6  ;;  %137 = vmatpush.msra.mxu1 %v130_v20  ;;  %v208_v6 = vld [vmem:[#allocation5 + $0x178] sm:$0xff] }
  0x19   :  { %209 = vmatpush.msra.mxu2 %v208_v6 }
  0x1a   :  { %66 = vmatpush.msra.mxu0 %v51_v7  ;;  %138 = vmatpush.msra.mxu1 %v129_v21  ;;  %v207_v7 = vld [vmem:[#allocation5 + $0x170] sm:$0xff]  ;;  %v200_v21 = vld [vmem:[#allocation5 + $0x138] sm:$0xff] }
  0x1b   :  { %210 = vmatpush.msra.mxu2 %v207_v7  ;;  %v276_v7 = vld [vmem:[#allocation5 + $0x1c0] sm:$0xff] }
  0x1c   :  { %67 = vmatpush.msra.mxu0 %v50_v8  ;;  %139 = vmatpush.msra.mxu1 %v128_v22  ;;  %v206_v8 = vld [vmem:[#allocation5 + $0x168] sm:$0xff] }
  0x1d   :  { %211 = vmatpush.msra.mxu2 %v206_v8 }
  0x1e   :  { %68 = vmatpush.msra.mxu0 %v49_v9  ;;  %140 = vmatpush.msra.mxu1 %v127_v26  ;;  %v205_v9 = vld [vmem:[#allocation5 + $0x160] sm:$0xff] }
  0x1f   :  { %212 = vmatpush.msra.mxu2 %v205_v9 }
  0x20   :  { %69 = vmatpush.msra.mxu0 %v48_v10  ;;  %141 = vmatpush.msra.mxu1 %v126_v29  ;;  %v204_v10 = vld [vmem:[#allocation5 + $0x158] sm:$0xff] }
  0x21   :  { %213 = vmatpush.msra.mxu2 %v204_v10  ;;  %v275_v10 = vld [vmem:[#allocation5 + $0x1b8] sm:$0xff] }
  0x22   :  { %70 = vmatpush.msra.mxu0 %v47_v11  ;;  %142 = vmatpush.msra.mxu1 %v125_v32  ;;  %v203_v11 = vld [vmem:[#allocation5 + $0x150] sm:$0xff] }
  0x23   :  { %214 = vmatpush.msra.mxu2 %v203_v11 }
  0x24   :  { %71 = vmatpush.msra.mxu0 %v46_v12  ;;  %143 = vmatpush.msra.mxu1 %v124_v35 }
  0x26   :  { %72 = vmatpush.msra.mxu0 %v45_v13  ;;  %144 = vmatpush.msra.mxu1 %v123_v38 }
  0x28   :  { %73 = vmatpush.msra.mxu0 %v44_v14  ;;  %145 = vmatpush.msra.mxu1 %v122_v41 }
  0x2a   :  { %74 = vmatpush.msra.mxu0 %v43_v15  ;;  %146 = vmatpush.msra.mxu1 %v121_v44  ;;  %v202_v15 = vld [vmem:[#allocation5 + $0x148] sm:$0xff] }
  0x2b   :  { %75 = vmatmul.f32.vlgmr.msra.gmra.mxu0 %v42_v16  ;;  %215 = vmatpush.msra.mxu2 %v202_v15 }
  0x2c   :  { %147 = vmatpush.msra.mxu1 %v120_v45 }
  0x2d   :  { %216 = vmatpush.msra.mxu2 %v201_v18 }
  0x2e   :  { %148 = vmatpush.msra.mxu1 %v119_v48 }
  0x2f   :  { %217 = vmatpush.msra.mxu2 %v200_v21 }
  0x30   :  { %149 = vmatpush.msra.mxu1 %v118_v50 }
  0xa8   :  { %v76_v23 = vpop.f32.mrf.mxu0 }
  0xa9   :  { %v81_v24 = vrot.slane %v76_v23, 4  ;;  %v87_v25 = vmul.f32 %v76_v23, %v76_v23 }
  0xab   :  { %v82_v27 = vadd.f32 %v81_v24, %v76_v23  ;;  %v88_v28 = vrot.slane %v87_v25, 4  ;;  %v199_v24 = vld [vmem:[#allocation5 + $0x130] sm:$0xff] }
  0xac   :  { %218 = vmatpush.msra.mxu2 %v199_v24 }
  0xad   :  { %v83_v30 = vrot.slane %v82_v27, 2  ;;  %v89_v31 = vadd.f32 %v88_v28, %v87_v25 }
  0xaf   :  { %v84_v33 = vadd.f32 %v83_v30, %v82_v27  ;;  %v90_v34 = vrot.slane %v89_v31, 2  ;;  %v198_v27 = vld [vmem:[#allocation5 + $0x128] sm:$0xff]  ;;  %v197_v30 = vld [vmem:[#allocation5 + $0x120] sm:$0xff] }
  0xb0   :  { %219 = vmatpush.msra.mxu2 %v198_v27 }
  0xb1   :  { %v85_v36 = vrot.slane %v84_v33, 1  ;;  %v91_v37 = vadd.f32 %v90_v34, %v89_v31  ;;  %v195_v34 = vld [vmem:[#allocation5 + $0x110] sm:$0xff] }
  0xb2   :  { %220 = vmatpush.msra.mxu2 %v197_v30 }
  0xb3   :  { %v86_v39 = vadd.f32 %v85_v36, %v84_v33  ;;  %v92_v40 = vrot.slane %v91_v37, 1  ;;  %v196_v33 = vld [vmem:[#allocation5 + $0x118] sm:$0xff] }
  0xb4   :  { %221 = vmatpush.msra.mxu2 %v196_v33 }
  0xb5   :  { %v93_v42 = vadd.f32 %v92_v40, %v91_v37  ;;  %v94_v43 = vmul.f32 0.125, %v86_v39  ;;  %v194_v37 = vld [vmem:[#allocation5 + $0x108] sm:$0xff]  ;;  %v193_v39 = vld [vmem:[#allocation5 + $0x100] sm:$0xff] }
  0xb6   :  { %222 = vmatpush.msra.mxu2 %v195_v34 }
  0xb7   :  { %v95_v46 = vmul.f32 0.125, %v93_v42  ;;  %v96_v47 = vmul.f32 %v94_v43, %v94_v43 }
  0xb8   :  { %223 = vmatpush.msra.mxu2 %v194_v37 }
  0xb9   :  { %v97_v49 = vsub.f32 %v95_v46, %v96_v47  ;;  %v154_v47 = vld [vmem:[#allocation5 + $0x218] sm:$0x1] }
  0xba   :  { %224 = vmatpush.msra.mxu2 %v193_v39 }
  0xbb   :  { %v98_v51 = vmax.f32 %v97_v49, 0.0 }
  0xbd   :  { %v99_v52 = vadd.f32 1e-05, %v98_v51  ;;  %v155_v51 = vld [vmem:[#allocation5 + $0x220] sm:$0x1] }
  0xbf   :  { %331 = vrsqrt.f32 %v99_v52  ;;  %vm106_vm1 = vweird.f32 %v99_v52 }
  0xc5   :  { %v332_v53 = vpop.eup %331 }
  0xc6   :  { %v101_v54 = vmul.f32 %v332_v53, %v99_v52  ;;  %vm107_vm0 = vweird.f32 %v332_v53 }
  0xc7   :  { %vm108_vm2 = vmor %vm106_vm1, %vm107_vm0 }
  0xc8   :  { %v102_v55 = vmul.f32 %v332_v53, %v101_v54 }
  0xca   :  { %v103_v56 = vmul.f32 0.5, %v102_v55 }
  0xcc   :  { %v104_v57 = vsub.f32 1.5, %v103_v56 }
  0xce   :  { %v105_v59 = vmul.f32 %v332_v53, %v104_v57 }
  0xd0   :  { %v109_v60 = vsel %vm108_vm2, %v332_v53, %v105_v59  ;;  %v283_v59 = vld [vmem:[#allocation5 + $0x1f8] sm:$0xff] }
  0xd1   :  { %v110_v61 = vmul.f32 %v109_v60, %v79_v58  ;;  %286 = vmatpush.msra.mxu3 %v283_v59  ;;  %v282_v60 = vld [vmem:[#allocation5 + $0x1f0] sm:$0xff] }
  0xd3   :  { %v113_v63 = vperm.slane %v110_v61, 0  ;;  %v111_v0 = vmul.f32 %v110_v61, %v94_v43  ;;  %287 = vmatpush.msra.mxu3 %v282_v60  ;;  %v281_v61 = vld [vmem:[#allocation5 + $0x1e8] sm:$0xff] }
  0xd5   :  { %v112_v1 = vsub.f32 %v80_v62, %v111_v0  ;;  %v114_v2 = vmul.f32 %v113_v63, %v76_v23  ;;  %288 = vmatpush.msra.mxu3 %v281_v61  ;;  %v280_v62 = vld [vmem:[#allocation5 + $0x1e0] sm:$0xff]  ;;  %v279_v63 = vld [vmem:[#allocation5 + $0x1d8] sm:$0xff]  ;;  %v278_v0 = vld [vmem:[#allocation5 + $0x1d0] sm:$0xff] }
  0xd7   :  { %v115_v3 = vperm.slane %v112_v1, 0  ;;  %289 = vmatpush.msra.mxu3 %v280_v62 }
  0xd9   :  { %v116_v4 = vadd.f32 %v115_v3, %v114_v2  ;;  %290 = vmatpush.msra.mxu3 %v279_v63 }
  0xdb   :  { %v117_v5 = vmax.f32 %v116_v4, 0.0  ;;  %291 = vmatpush.msra.mxu3 %v278_v0  ;;  %v277_v4 = vld [vmem:[#allocation5 + $0x1c8] sm:$0xff] }
  0xdd   :  { %150 = vmatmul.f32.vlgmr.msra.gmra.mxu1 %v117_v5  ;;  %292 = vmatpush.msra.mxu3 %v277_v4 }
  0xdf   :  { %293 = vmatpush.msra.mxu3 %v276_v7 }
  0xe1   :  { %294 = vmatpush.msra.mxu3 %v275_v10 }
 0x15a   :  { %v151_v12 = vpop.f32.mrf.mxu1 }
 0x15b   :  { %v156_v13 = vrot.slane %v151_v12, 4  ;;  %v162_v14 = vmul.f32 %v151_v12, %v151_v12 }
 0x15d   :  { %v157_v16 = vadd.f32 %v156_v13, %v151_v12  ;;  %v163_v17 = vrot.slane %v162_v14, 4  ;;  %v274_v13 = vld [vmem:[#allocation5 + $0x1b0] sm:$0xff] }
 0x15e   :  { %295 = vmatpush.msra.mxu3 %v274_v13 }
 0x15f   :  { %v158_v19 = vrot.slane %v157_v16, 2  ;;  %v164_v20 = vadd.f32 %v163_v17, %v162_v14 }
 0x161   :  { %v159_v22 = vadd.f32 %v158_v19, %v157_v16  ;;  %v165_v23 = vrot.slane %v164_v20, 2  ;;  %v273_v16 = vld [vmem:[#allocation5 + $0x1a8] sm:$0xff]  ;;  %v272_v19 = vld [vmem:[#allocation5 + $0x1a0] sm:$0xff] }
 0x162   :  { %296 = vmatpush.msra.mxu3 %v273_v16 }
 0x163   :  { %v160_v25 = vrot.slane %v159_v22, 1  ;;  %v166_v26 = vadd.f32 %v165_v23, %v164_v20  ;;  %v270_v23 = vld [vmem:[#allocation5 + $0x190] sm:$0xff] }
 0x164   :  { %297 = vmatpush.msra.mxu3 %v272_v19 }
 0x165   :  { %v161_v28 = vadd.f32 %v160_v25, %v159_v22  ;;  %v167_v29 = vrot.slane %v166_v26, 1  ;;  %v271_v22 = vld [vmem:[#allocation5 + $0x198] sm:$0xff] }
 0x166   :  { %298 = vmatpush.msra.mxu3 %v271_v22 }
 0x167   :  { %v168_v31 = vadd.f32 %v167_v29, %v166_v26  ;;  %v169_v32 = vmul.f32 0.125, %v161_v28  ;;  %v269_v26 = vld [vmem:[#allocation5 + $0x188] sm:$0xff]  ;;  %v268_v28 = vld [vmem:[#allocation5 + $0x180] sm:$0xff] }
 0x168   :  { %299 = vmatpush.msra.mxu3 %v270_v23 }
 0x169   :  { %v170_v35 = vmul.f32 0.125, %v168_v31  ;;  %v171_v36 = vmul.f32 %v169_v32, %v169_v32 }
 0x16a   :  { %300 = vmatpush.msra.mxu3 %v269_v26 }
 0x16b   :  { %v172_v38 = vsub.f32 %v170_v35, %v171_v36  ;;  %v229_v36 = vld [vmem:[#allocation5 + $0x228] sm:$0x1] }
 0x16c   :  { %301 = vmatpush.msra.mxu3 %v268_v28 }
 0x16d   :  { %v173_v40 = vmax.f32 %v172_v38, 0.0 }
 0x16f   :  { %v174_v41 = vadd.f32 1e-05, %v173_v40  ;;  %v230_v40 = vld [vmem:[#allocation5 + $0x230] sm:$0x1] }
 0x171   :  { %333 = vrsqrt.f32 %v174_v41  ;;  %vm181_vm4 = vweird.f32 %v174_v41 }
 0x177   :  { %v334_v42 = vpop.eup %333 }
 0x178   :  { %v176_v43 = vmul.f32 %v334_v42, %v174_v41  ;;  %vm182_vm3 = vweird.f32 %v334_v42 }
 0x179   :  { %vm183_vm5 = vmor %vm181_vm4, %vm182_vm3 }
 0x17a   :  { %v177_v44 = vmul.f32 %v334_v42, %v176_v43 }
 0x17c   :  { %v178_v45 = vmul.f32 0.5, %v177_v44 }
 0x17e   :  { %v179_v46 = vsub.f32 1.5, %v178_v45 }
 0x180   :  { %v180_v48 = vmul.f32 %v334_v42, %v179_v46 }
 0x182   :  { %v184_v49 = vsel %vm183_vm5, %v334_v42, %v180_v48  ;;  %v330_v48 = vld [vmem:[#allocation5 + $0x200] ss:$0 sm:$0xff] }
 0x183   :  { %v185_v50 = vmul.f32 %v184_v49, %v154_v47 }
 0x185   :  { %v188_v52 = vperm.slane %v185_v50, 0  ;;  %v186_v53 = vmul.f32 %v185_v50, %v169_v32 }
 0x187   :  { %v187_v54 = vsub.f32 %v155_v51, %v186_v53  ;;  %v189_v55 = vmul.f32 %v188_v52, %v151_v12 }
 0x189   :  { %v190_v56 = vperm.slane %v187_v54, 0 }
 0x18b   :  { %v191_v57 = vadd.f32 %v190_v56, %v189_v55 }
 0x18d   :  { %v192_v58 = vmax.f32 %v191_v57, 0.0 }
 0x18f   :  { %225 = vmatmul.f32.vlgmr.msra.gmra.mxu2 %v192_v58 }
 0x212   :  { %v226_v1 = vpop.f32.mrf.mxu2 }
 0x213   :  { %v231_v2 = vrot.slane %v226_v1, 4  ;;  %v237_v3 = vmul.f32 %v226_v1, %v226_v1 }
 0x215   :  { %v232_v5 = vadd.f32 %v231_v2, %v226_v1  ;;  %v238_v6 = vrot.slane %v237_v3, 4 }
 0x217   :  { %v233_v8 = vrot.slane %v232_v5, 2  ;;  %v239_v9 = vadd.f32 %v238_v6, %v237_v3 }
 0x219   :  { %v234_v11 = vadd.f32 %v233_v8, %v232_v5  ;;  %v240_v12 = vrot.slane %v239_v9, 2 }
 0x21b   :  { %v235_v14 = vrot.slane %v234_v11, 1  ;;  %v241_v15 = vadd.f32 %v240_v12, %v239_v9 }
 0x21d   :  { %v236_v17 = vadd.f32 %v235_v14, %v234_v11  ;;  %v242_v18 = vrot.slane %v241_v15, 1 }
 0x21f   :  { %v243_v20 = vadd.f32 %v242_v18, %v241_v15  ;;  %v244_v21 = vmul.f32 0.125, %v236_v17 }
 0x221   :  { %v245_v24 = vmul.f32 0.125, %v243_v20  ;;  %v246_v25 = vmul.f32 %v244_v21, %v244_v21 }
 0x223   :  { %v247_v27 = vsub.f32 %v245_v24, %v246_v25 }
 0x225   :  { %v248_v29 = vmax.f32 %v247_v27, 0.0 }
 0x227   :  { %v249_v30 = vadd.f32 1e-05, %v248_v29 }
 0x229   :  { %335 = vrsqrt.f32 %v249_v30  ;;  %vm256_vm7 = vweird.f32 %v249_v30 }
 0x22f   :  { %v336_v31 = vpop.eup %335 }
 0x230   :  { %v251_v32 = vmul.f32 %v336_v31, %v249_v30  ;;  %vm257_vm6 = vweird.f32 %v336_v31 }
 0x231   :  { %vm258_vm8 = vmor %vm256_vm7, %vm257_vm6 }
 0x232   :  { %v252_v33 = vmul.f32 %v336_v31, %v251_v32 }
 0x234   :  { %v253_v34 = vmul.f32 0.5, %v252_v33 }
 0x236   :  { %v254_v35 = vsub.f32 1.5, %v253_v34 }
 0x238   :  { %v255_v37 = vmul.f32 %v336_v31, %v254_v35 }
 0x23a   :  { %v259_v38 = vsel %vm258_vm8, %v336_v31, %v255_v37 }
 0x23b   :  { %v260_v39 = vmul.f32 %v259_v38, %v229_v36 }
 0x23d   :  { %v263_v41 = vperm.slane %v260_v39, 0  ;;  %v261_v42 = vmul.f32 %v260_v39, %v244_v21 }
 0x23f   :  { %v262_v43 = vsub.f32 %v230_v40, %v261_v42  ;;  %v264_v44 = vmul.f32 %v263_v41, %v226_v1 }
 0x241   :  { %v265_v45 = vperm.slane %v262_v43, 0 }
 0x243   :  { %v266_v46 = vadd.f32 %v265_v45, %v264_v44 }
 0x245   :  { %v267_v47 = vmax.f32 %v266_v46, 0.0 }
 0x247   :  { %302 = vmatmul.f32.vlgmr.msra.gmra.mxu3 %v267_v47 }
 0x2ca   :  { %v303_v49 = vpop.f32.mrf.mxu3 }
 0x2cb   :  { %v304_v50 = vadd.f32 %v330_v48, %v303_v49 }
 0x2cd   :  { %306 = vst [vmem:[#allocation7] sm:$0xff] %v304_v50 }
 0x2ce   :  { %317 = dma.vmem_to_hbm [thread:$0]  %s313_s1, 128, %s315_s23, [#allocation4]  }
 0x2cf   :  { %413 = dma.done.wait [#allocation4], 128  }
 0x2d0   :  { %414 = vsyncadd [#allocation4], 4294967168 }
 0x2d1   :  { %322 = vsyncpa [#allocation3], 1 }
 0x2d2   :  { %323 = vsyncpa [#allocation6], 1 }
 0x2d3   :  { %324 = vsyncpa [#allocation4], 1 }

</bundles_post_ra>
